<compile_context>
chip_gen: v6e
topology: v6e:2x2x1
jax: 0.10.0
libtpu: 0.0.40
codegen_flags: <defaults>
</compile_context>

<pallas_src>
import functools

import jax
import jax.numpy as jnp
from jax.experimental import pallas as pl
from jax.experimental.pallas import tpu as pltpu


_VMEM_BLOCK_BUDGET = 24 * 1024 * 1024   # budget for all double-buffered blocks
_VMEM_LIMIT_BYTES = 32 * 1024 * 1024    # safe on v5e / v6e / v7x
_MAX_BLOCK_ELEMS = 1 << 20              # ~4 MiB per block at f32


# ----------------------------------------------------------------------------
# Tiling plan + lane-dense layout helpers
# ----------------------------------------------------------------------------
def _choose_lane(total_elems):
    """Largest lane width (multiple of 128) that divides total -> no padding."""
    for lane in (1024, 512, 256, 128):
        if total_elems % lane == 0:
            return lane
    return 1024  # ragged: will pad


def _plan_tiles(total_elems, n_arrays, itemsize):
    """Pick (lane, tile_rows, grid_m, padded_rows) for a lane-dense 2D layout."""
    lane = _choose_lane(total_elems)
    rows = -(-total_elems // lane)  # ceil div
    # Largest row-tile such that n_arrays * 2 buffers * block bytes <= budget,
    # with the per-block element count also capped (~4 MiB at f32).
    max_tm = _VMEM_BLOCK_BUDGET // (n_arrays * 2 * lane * itemsize)
    max_tm = min(max_tm, _MAX_BLOCK_ELEMS // lane)
    max_tm = max(8, (max_tm // 8) * 8)
    if rows <= max_tm:
        tm = rows            # single row-block: full extent, no (8,128) issue
        grid_m = 1
    else:
        tm = max_tm          # multiple of 8; lane is a multiple of 128
        grid_m = -(-rows // tm)
    padded_rows = grid_m * tm
    return lane, tm, grid_m, padded_rows


def _to_lane_dense(x, padded_total, rows, lane):
    flat = x.reshape(-1)
    if flat.shape[0] != padded_total:
        flat = jnp.pad(flat, (0, padded_total - flat.shape[0]))
    return flat.reshape(rows, lane)


def _from_lane_dense(out2, total, orig_shape):
    flat = out2.reshape(-1)
    if flat.shape[0] != total:
        flat = flat[:total]
    return flat.reshape(orig_shape)


# ----------------------------------------------------------------------------
# Kernel 1: elementwise |y_pred - y_true|   (W == [] path)
# ----------------------------------------------------------------------------
def _absdiff_kernel(p_ref, t_ref, o_ref):
    o_ref[...] = jnp.abs(p_ref[...] - t_ref[...])


def abs_diff_loss(y_pred, y_true):
    assert y_pred.shape == y_true.shape and y_pred.dtype == y_true.dtype
    orig_shape = y_pred.shape
    total = y_pred.size
    itemsize = jnp.dtype(y_pred.dtype).itemsize

    lane, tm, grid_m, padded_rows = _plan_tiles(total, n_arrays=3,
                                                itemsize=itemsize)
    padded_total = padded_rows * lane

    p2 = _to_lane_dense(y_pred, padded_total, padded_rows, lane)
    t2 = _to_lane_dense(y_true, padded_total, padded_rows, lane)

    out2 = pl.pallas_call(
        _absdiff_kernel,
        out_shape=jax.ShapeDtypeStruct((padded_rows, lane), y_pred.dtype),
        grid=(grid_m,),
        in_specs=[
            pl.BlockSpec((tm, lane), lambda i: (i, 0)),
            pl.BlockSpec((tm, lane), lambda i: (i, 0)),
        ],
        out_specs=pl.BlockSpec((tm, lane), lambda i: (i, 0)),
        compiler_params=pltpu.CompilerParams(
            dimension_semantics=("parallel",),
            vmem_limit_bytes=_VMEM_LIMIT_BYTES,
        ),
    )(p2, t2)
    return _from_lane_dense(out2, total, orig_shape)


# ----------------------------------------------------------------------------
# Kernel 2: weighted sum  loss = sum_i W[i] * L[i]   (W non-empty path)
# Each L_i is its own input (no stack); static weights baked in; K unrolled;
# accumulation in f32, cast to output dtype at the end.
# ----------------------------------------------------------------------------
def _weighted_sum_kernel(*refs, weights):
    l_refs = refs[:-1]
    o_ref = refs[-1]
    acc = weights[0] * l_refs[0][...].astype(jnp.float32)
    for w, l_ref in zip(weights[1:], l_refs[1:]):
        acc = acc + w * l_ref[...].astype(jnp.float32)
    o_ref[...] = acc.astype(o_ref.dtype)


def weighted_loss(L_list, W_list):
    assert len(L_list) == len(W_list) and len(W_list) > 0
    orig_shape = L_list[0].shape
    out_dtype = L_list[0].dtype
    for l in L_list:
        assert l.shape == orig_shape
    total = L_list[0].size
    K = len(L_list)
    itemsize = max(jnp.dtype(l.dtype).itemsize for l in L_list)

    lane, tm, grid_m, padded_rows = _plan_tiles(total, n_arrays=K + 1,
                                                itemsize=max(itemsize, 4))
    padded_total = padded_rows * lane

    Ls2 = [_to_lane_dense(l, padded_total, padded_rows, lane) for l in L_list]
    weights = tuple(float(w) for w in W_list)
    kernel = functools.partial(_weighted_sum_kernel, weights=weights)

    out2 = pl.pallas_call(
        kernel,
        out_shape=jax.ShapeDtypeStruct((padded_rows, lane), out_dtype),
        grid=(grid_m,),
        in_specs=[pl.BlockSpec((tm, lane), lambda i: (i, 0)) for _ in range(K)],
        out_specs=pl.BlockSpec((tm, lane), lambda i: (i, 0)),
        compiler_params=pltpu.CompilerParams(
            dimension_semantics=("parallel",),
            vmem_limit_bytes=_VMEM_LIMIT_BYTES,
        ),
    )(*Ls2)
    return _from_lane_dense(out2, total, orig_shape)


# ----------------------------------------------------------------------------
# Module-equivalent wrapper
# ----------------------------------------------------------------------------
def custom_weighted_loss(y_pred, y_true, W=(), L=()):
    # TODO(synk): if the L_i are produced by upstream elementwise losses, fuse
    # the weighted sum into that producer kernel to avoid materializing them.
    if len(W) == 0:
        return abs_diff_loss(y_pred, y_true)
    return weighted_loss(list(L), list(W))


if __name__ == "__main__":
    key = jax.random.PRNGKey(0)
    k1, k2, k3, k4, k5, k6, k7, k8, k9 = jax.random.split(key, 9)

    B, C, H, W = 2, 4, 16, 16  # NCHW
    y_pred = jax.random.normal(k1, (B, C, H, W), dtype=jnp.float32)
    y_true = jax.random.normal(k2, (B, C, H, W), dtype=jnp.float32)

    # Path 1: W == []  ->  |y_pred - y_true|   (total=2048, lane=1024, no pad)
    loss1 = custom_weighted_loss(y_pred, y_true)
    loss1 = jax.block_until_ready(loss1)
    ref1 = jnp.abs(y_pred - y_true)
    assert loss1.shape == y_pred.shape
    assert jnp.allclose(loss1, ref1, atol=1e-6, rtol=1e-6)

    # Path 1b: ragged / non-128-aligned size exercises the padding path.
    a = jax.random.normal(k6, (3, 5, 7, 11), dtype=jnp.float32)
    b = jax.random.normal(k7, (3, 5, 7, 11), dtype=jnp.float32)
    loss1b = jax.block_until_ready(custom_weighted_loss(a, b))
    assert loss1b.shape == a.shape
    assert jnp.allclose(loss1b, jnp.abs(a - b), atol=1e-6, rtol=1e-6)

    # Path 1c: 128-aligned but not 1024-aligned size -> adaptive lane, no pad.
    c = jax.random.normal(k8, (1, 3, 8, 16), dtype=jnp.float32)   # total=384
    d = jax.random.normal(k9, (1, 3, 8, 16), dtype=jnp.float32)
    loss1c = jax.block_until_ready(custom_weighted_loss(c, d))
    assert loss1c.shape == c.shape
    assert jnp.allclose(loss1c, jnp.abs(c - d), atol=1e-6, rtol=1e-6)

    # Path 2: non-empty W / L  ->  sum_i W[i] * L[i]
    L_list = [
        jax.random.normal(k3, (B, C, H, W), dtype=jnp.float32),
        jax.random.normal(k4, (B, C, H, W), dtype=jnp.float32),
        jax.random.normal(k5, (B, C, H, W), dtype=jnp.float32),
    ]
    W_list = [0.5, 1.25, -0.75]
    loss2 = custom_weighted_loss(y_pred, y_true, W=W_list, L=L_list)
    loss2 = jax.block_until_ready(loss2)
    ref2 = sum(w * l for w, l in zip(W_list, L_list))
    assert loss2.shape == y_pred.shape
    assert jnp.allclose(loss2, ref2, atol=1e-5, rtol=1e-5)

    print("KERNEL_OK")
</pallas_src>

<mosaic_0001>
module attributes {stable_mosaic.version = 11 : i64} {
  func.func @_absdiff_kernel(%arg0: i32, %arg1: memref<2x1024xf32, #tpu.memory_space<vmem>>, %arg2: memref<2x1024xf32, #tpu.memory_space<vmem>>, %arg3: memref<2x1024xf32, #tpu.memory_space<vmem>>) attributes {dimension_semantics = [#tpu.dimension_semantics<parallel>], iteration_bounds = array<i64: 1>, scalar_prefetch = 0 : i64, scratch_operands = 0 : i64, tpu.core_type = #tpu.core_type<tc>, window_params = [{transform_indices = @transform_0, window_bounds = array<i64: 2, 1024>}, {transform_indices = @transform_1, window_bounds = array<i64: 2, 1024>}, {transform_indices = @transform_2, window_bounds = array<i64: 2, 1024>}]} {
    %c0 = arith.constant 0 : index
    %c0_0 = arith.constant 0 : index
    %0 = vector.load %arg1[%c0, %c0_0] : memref<2x1024xf32, #tpu.memory_space<vmem>>, vector<2x1024xf32>
    %c0_1 = arith.constant 0 : index
    %c0_2 = arith.constant 0 : index
    %1 = vector.load %arg2[%c0_1, %c0_2] : memref<2x1024xf32, #tpu.memory_space<vmem>>, vector<2x1024xf32>
    %2 = arith.subf %0, %1 : vector<2x1024xf32>
    %3 = math.absf %2 : vector<2x1024xf32>
    %c0_3 = arith.constant 0 : index
    %c0_4 = arith.constant 0 : index
    %4 = vector.load %arg3[%c0_3, %c0_4] : memref<2x1024xf32, #tpu.memory_space<vmem>>, vector<2x1024xf32>
    tpu.vector_store %arg3[%c0_3, %c0_4], %3 {strides = array<i32>} : memref<2x1024xf32, #tpu.memory_space<vmem>>, vector<2x1024xf32>,
    return
  }
  func.func @transform_0(%arg0: i32) -> (i32, i32) {
    %c0_i32 = arith.constant 0 : i32
    %c0_i32_0 = arith.constant 0 : i32
    return %arg0, %c0_i32 : i32, i32
  }
  func.func @transform_1(%arg0: i32) -> (i32, i32) {
    %c0_i32 = arith.constant 0 : i32
    %c0_i32_0 = arith.constant 0 : i32
    return %arg0, %c0_i32 : i32, i32
  }
  func.func @transform_2(%arg0: i32) -> (i32, i32) {
    %c0_i32 = arith.constant 0 : i32
    %c0_i32_0 = arith.constant 0 : i32
    return %arg0, %c0_i32 : i32, i32
  }
}

</mosaic_0001>

<bundles_post_ra>
// kernel: tpu_custom_call.1
= control target key start
LH: loop header
LB: loop body
LE: loop exit
PB: predicated region body
PF: predicated region fallthrough
CT: control target
= control target key end

     0   :  { %7 = vsyncpa [#allocation3], 0  ;;  %s158_s0 = inlined_call_operand.hbm [shape: f32[2,1024], index: 0, kind: input, shape index: {}]   ;;  %s159_s1 = inlined_call_operand.hbm [shape: f32[2,1024], index: 1, kind: input, shape index: {}]   ;;  %s160_s2 = inlined_call_operand.hbm [shape: f32[2,1024], index: 2, kind: output, shape index: {}]  }
   0x1   :  { %8 = vsyncpa [#allocation6], 0 }
   0x2   :  { %9 = vsyncpa [#allocation4], 0  ;;  %s131_s9 = smov [#allocation2]   ;;  %s132_s11 = smov [#allocation5]  }
   0x3   :  { %s16_s10 = sshll.u32 %s131_s9, 4  ;;  %s26_s12 = sshll.u32 %s132_s11, 4  ;;  %s17_s10 = int_to_ptr.vmem [resolvable:$true] %s16_s10  ;;  %s27_s12 = int_to_ptr.vmem [resolvable:$true] %s26_s12 }
   0x4   :  { %s73_s13 = scalar_lea.vmem %s17_s10, 256  ;;  %p78_p1 = scmp.lt.s32.totalorder %s17_s10, %s17_s10 }
   0x5   :  { %p74_p0 = scmp.ne.s32.totalorder %s17_s10, %s73_s13  ;;  %p79_p2 = scmp.lt.s32.totalorder %s73_s13, %s73_s13 }
   0x7   :  { %p80_p3 = por %p79_p2, %p78_p1 }
   0x9   :  { %p81_p4 = pnand %p80_p3, %p74_p0 }
   0xb   :  { %84 = shalt.err (!%p81_p4)
}
   0xc   :  { %19 = dma.hbm_to_vmem [thread:$0]  %s158_s0, 256, %s17_s10, [#allocation3]  }
   0xd   :  { %s93_s16 = scalar_lea.vmem %s27_s12, 256  ;;  %p98_p6 = scmp.lt.s32.totalorder %s27_s12, %s27_s12 }
   0xe   :  { %p94_p5 = scmp.ne.s32.totalorder %s27_s12, %s93_s16  ;;  %p99_p7 = scmp.lt.s32.totalorder %s93_s16, %s93_s16 }
  0x10   :  { %p100_p8 = por %p99_p7, %p98_p6 }
  0x12   :  { %p101_p9 = pnand %p100_p8, %p94_p5 }
  0x14   :  { %104 = shalt.err (!%p101_p9)
}
  0x15   :  { %29 = dma.hbm_to_vmem [thread:$0]  %s159_s1, 256, %s27_s12, [#allocation6]  }
  0x16   :  { %125 = dma.done.wait [#allocation3], 256  }
  0x17   :  { %126 = vsyncadd [#allocation3], 4294967040 }
  0x18   :  { %127 = dma.done.wait [#allocation6], 256  }
  0x19   :  { %128 = vsyncadd [#allocation6], 4294967040  ;;  %v36_v0 = vld [vmem:[#allocation2] sm:$0xff]  ;;  %v38_v1 = vld [vmem:[#allocation5] sm:$0xff]  ;;  %s133_s0 = smov [#allocation7]  }
  0x1a   :  { %v37_v2 = vld [vmem:[#allocation2 + $0x8] sm:$0xff]  ;;  %v40_v3 = vsub.f32 %v36_v0, %v38_v1  ;;  %v39_v4 = vld [vmem:[#allocation5 + $0x8] sm:$0xff]  ;;  %s52_s19 = sshll.u32 %s133_s0, 4  ;;  %s53_s19 = int_to_ptr.vmem [resolvable:$true] %s52_s19 }
  0x1b   :  { %v41_v5 = vsub.f32 %v37_v2, %v39_v4  ;;  %s105_s20 = scalar_lea.vmem %s53_s19, 256  ;;  %p110_p11 = scmp.lt.s32.totalorder %s53_s19, %s53_s19 }
  0x1c   :  { %v42_v6 = vand.u32 2147483647, %v40_v3  ;;  %p106_p10 = scmp.ne.s32.totalorder %s53_s19, %s105_s20  ;;  %p111_p12 = scmp.lt.s32.totalorder %s105_s20, %s105_s20 }
  0x1d   :  { %v43_v7 = vand.u32 2147483647, %v41_v5 }
  0x1e   :  { %44 = vst [vmem:[#allocation7] sm:$0xff] %v42_v6  ;;  %p112_p13 = por %p111_p12, %p110_p11 }
  0x1f   :  { %45 = vst [vmem:[#allocation7 + $0x8] sm:$0xff] %v43_v7 }
  0x20   :  { %p113_p0 = pnand %p112_p13, %p106_p10 }
  0x22   :  { %116 = shalt.err (!%p113_p0)
}
  0x23   :  { %55 = dma.vmem_to_hbm [thread:$0]  %s53_s19, 256, %s160_s2, [#allocation4]  }
  0x24   :  { %129 = dma.done.wait [#allocation4], 256  }
  0x25   :  { %130 = vsyncadd [#allocation4], 4294967040 }
  0x26   :  { %59 = vsyncpa [#allocation3], 1 }
  0x27   :  { %60 = vsyncpa [#allocation6], 1 }
  0x28   :  { %61 = vsyncpa [#allocation4], 1 }

</bundles_post_ra>
